<compile_context>
chip_gen: v5e
topology: v5e:2x2
jax: 0.10.0
libtpu: 0.0.40
codegen_flags: <defaults>
</compile_context>

<pallas_src>
import math
from functools import partial

import jax
import jax.numpy as jnp
from jax.experimental import pallas as pl
from jax.experimental.pallas import tpu as pltpu


def _build_pe(max_len: int, d_model: int, dtype=jnp.float32) -> jnp.ndarray:
    """Deterministic sinusoidal positional-encoding buffer, identical to the
    PyTorch __init__ construction. Returns shape (max_len, 1, d_model)."""
    position = jnp.arange(0, max_len, dtype=jnp.float32)[:, None]          # (L, 1)
    div_term = jnp.exp(
        jnp.arange(0, d_model, 2, dtype=jnp.float32) *
        (-math.log(10000.0) / d_model)
    )                                                                       # (D/2,)
    pe = jnp.zeros((max_len, d_model), dtype=jnp.float32)
    pe = pe.at[:, 0::2].set(jnp.sin(position * div_term))
    pe = pe.at[:, 1::2].set(jnp.cos(position * div_term))
    pe = pe[:, None, :]                                                     # (L, 1, D)
    return pe.astype(dtype)


def _pe_add_kernel(x_ref, pe_ref, o_ref, *, batch: int):
    # x_ref/o_ref: (ts, B*D) lane-dense tiles; pe_ref: (ts, D).
    pe = pe_ref[...]
    if batch > 1:
        # Replicate pe along lanes to match the (b0:d0..dD-1, b1:d0..dD-1, ...)
        # flattened layout. VPU/XLU slack is huge here (HBM-bound kernel).
        pe = jnp.tile(pe, (1, batch))
    o_ref[...] = x_ref[...] + pe


def _sublane(itemsize: int) -> int:
    return {4: 8, 2: 16, 1: 32}.get(itemsize, 8)


def _padded_row_bytes(last_dim: int, itemsize: int) -> int:
    # One sequence-row of a (ts, last_dim) block, padded to full 128-lane vregs.
    return pl.cdiv(last_dim, 128) * 128 * itemsize


def _choose_tile_s(S: int, bd: int, d: int, itemsize: int, vmem_budget: int) -> int:
    """Largest sublane-aligned S-tile whose padded, double-buffered footprint
    (2x x + 2x out + 2x pe) stays under vmem_budget, capped so the grid keeps
    >= ~8 steps when S permits (v7x megacore split + deep pipelining)."""
    sub = _sublane(itemsize)
    per_row = 2 * (2 * _padded_row_bytes(bd, itemsize) + _padded_row_bytes(d, itemsize))
    ts = max(sub, (vmem_budget // per_row) // sub * sub)
    # Aim for >= 8 grid steps (neutral on single-TC v5e/v6e, ~2x on v7x for
    # small/medium shapes where one big tile would idle a TensorCore).
    ts_cap = max(sub, pl.cdiv(pl.cdiv(S, 8), sub) * sub)
    ts = min(ts, ts_cap)
    if ts >= S:
        return S            # single full-extent block (always layout-legal)
    return ts               # multiple of the sublane tile


def positional_encoding_forward(x: jnp.ndarray, pe: jnp.ndarray) -> jnp.ndarray:
    """x: (S, B, D); pe: (max_len, 1, D). Returns x + pe[:S] (PyTorch promotion)."""
    S, B, D = x.shape
    # PyTorch: f32 pe buffer + half/bf16 x promotes the add (and result) to f32.
    out_dtype = jnp.promote_types(x.dtype, pe.dtype)
    itemsize = jnp.dtype(out_dtype).itemsize

    # Wrapper-side layout plumbing (free): lane-dense 2-D views.
    x2 = x.reshape(S, B * D).astype(out_dtype)                              # (S, B*D)
    pe2 = pe[:S].reshape(S, D).astype(out_dtype)                            # (S, D)

    # Generation-aware VMEM budgeting (v7x: 64 MiB/TC, v5e/v6e: 128 MiB).
    try:
        vmem_cap = pltpu.get_tpu_info().vmem_capacity_bytes
    except Exception:  # pragma: no cover - conservative fallback
        vmem_cap = 64 * 1024 * 1024
    vmem_limit = int(vmem_cap * 3 // 4)                  # explicit scoped limit
    tile_budget = min(vmem_cap // 2, 48 * 1024 * 1024)   # double-buffered tiles

    ts = _choose_tile_s(S, B * D, D, itemsize, tile_budget)
    grid = (pl.cdiv(S, ts),)

    out2 = pl.pallas_call(
        partial(_pe_add_kernel, batch=B),
        out_shape=jax.ShapeDtypeStruct((S, B * D), out_dtype),
        grid_spec=pl.GridSpec(
            grid=grid,
            in_specs=[
                pl.BlockSpec((ts, B * D), lambda i: (i, 0)),   # x (lane-dense)
                pl.BlockSpec((ts, D), lambda i: (i, 0)),       # pe (1/B of x traffic)
            ],
            out_specs=pl.BlockSpec((ts, B * D), lambda i: (i, 0)),
        ),
        # The op is x += pe: donate x's (already cast/flattened) HBM buffer.
        input_output_aliases={0: 0},
        compiler_params=pltpu.CompilerParams(
            dimension_semantics=("parallel",),
            vmem_limit_bytes=vmem_limit,
        ),
    )(x2, pe2)
    return out2.reshape(S, B, D)


if __name__ == "__main__":
    d_model = 32
    max_len = 64
    seq_len = 8
    batch = 2

    key = jax.random.PRNGKey(0)
    x = jax.random.normal(key, (seq_len, batch, d_model), dtype=jnp.float32)

    pe = _build_pe(max_len, d_model)

    # Compute the plain-JAX reference BEFORE the kernel call (x may be donated).
    ref = x + pe[:seq_len]

    out = positional_encoding_forward(x, pe)
    out = jax.block_until_ready(out)

    assert out.shape == (seq_len, batch, d_model)
    assert jnp.allclose(out, ref, atol=1e-6), "mismatch vs reference"

    print("KERNEL_OK")
</pallas_src>

<mosaic_0001>
module attributes {stable_mosaic.version = 11 : i64} {
  func.func @_pe_add_kernel(%arg0: i32, %arg1: memref<8x64xf32, #tpu.memory_space<vmem>>, %arg2: memref<8x32xf32, #tpu.memory_space<vmem>>, %arg3: memref<8x64xf32, #tpu.memory_space<vmem>>) attributes {dimension_semantics = [#tpu.dimension_semantics<parallel>], iteration_bounds = array<i64: 1>, scalar_prefetch = 0 : i64, scratch_operands = 0 : i64, tpu.core_type = #tpu.core_type<tc>, window_params = [{transform_indices = @transform_0, window_bounds = array<i64: 8, 64>}, {transform_indices = @transform_1, window_bounds = array<i64: 8, 32>}, {transform_indices = @transform_2, window_bounds = array<i64: 8, 64>}]} {
    %c0 = arith.constant 0 : index
    %c0_0 = arith.constant 0 : index
    %0 = vector.load %arg2[%c0, %c0_0] : memref<8x32xf32, #tpu.memory_space<vmem>>, vector<8x32xf32>
    %1 = tpu.concatenate %0, %0 in 1 : vector<8x32xf32>, vector<8x32xf32> -> vector<8x64xf32>
    %c0_1 = arith.constant 0 : index
    %c0_2 = arith.constant 0 : index
    %2 = vector.load %arg1[%c0_1, %c0_2] : memref<8x64xf32, #tpu.memory_space<vmem>>, vector<8x64xf32>
    %3 = arith.addf %2, %1 : vector<8x64xf32>
    %c0_3 = arith.constant 0 : index
    %c0_4 = arith.constant 0 : index
    %4 = vector.load %arg3[%c0_3, %c0_4] : memref<8x64xf32, #tpu.memory_space<vmem>>, vector<8x64xf32>
    tpu.vector_store %arg3[%c0_3, %c0_4], %3 {strides = array<i32>} : memref<8x64xf32, #tpu.memory_space<vmem>>, vector<8x64xf32>,
    return
  }
  func.func @transform_0(%arg0: i32) -> (i32, i32) {
    %c0_i32 = arith.constant 0 : i32
    %c0_i32_0 = arith.constant 0 : i32
    return %arg0, %c0_i32 : i32, i32
  }
  func.func @transform_1(%arg0: i32) -> (i32, i32) {
    %c0_i32 = arith.constant 0 : i32
    %c0_i32_0 = arith.constant 0 : i32
    return %arg0, %c0_i32 : i32, i32
  }
  func.func @transform_2(%arg0: i32) -> (i32, i32) {
    %c0_i32 = arith.constant 0 : i32
    %c0_i32_0 = arith.constant 0 : i32
    return %arg0, %c0_i32 : i32, i32
  }
}

</mosaic_0001>

<bundles_post_ra>
// kernel: tpu_custom_call.1
= control target key start
LH: loop header
LB: loop body
LE: loop exit
PB: predicated region body
PF: predicated region fallthrough
CT: control target
= control target key end

     0   :  { %7 = vsyncpa [#allocation3], 0  ;;  %s136_s0 = inlined_call_operand.hbm [shape: f32[8,64], index: 0, kind: input, shape index: {}, may-alias: {0,2}]   ;;  %s137_s1 = inlined_call_operand.vmem [shape: f32[8,32], index: 1, kind: input, shape index: {}]   ;;  %s138_s2 = inlined_call_operand.hbm [shape: f32[8,64], index: 2, kind: output, shape index: {}, may-alias: {0,2}]  }
   0x1   :  { %8 = vsyncpa [#allocation4], 0  ;;  %s14_s11 = sshll.u32 %s136_s0, 4  ;;  %s109_s12 = smov [#allocation2]   ;;  %s15_s11 = int_to_ptr.hbm [resolvable:$true] %s14_s11 }
   0x2   :  { %s16_s13 = sshll.u32 %s109_s12, 4  ;;  %s17_s13 = int_to_ptr.vmem [resolvable:$true] %s16_s13 }
   0x3   :  { %19 = dma.hbm_to_vmem [thread:$0]  %s15_s11, 128, %s17_s13, [#allocation3]  }
   0x4   :  { %105 = dma.done.wait [#allocation3], 128  }
   0x5   :  { %106 = vsyncadd [#allocation3], 4294967168  ;;  %v26_v0 = vld [vmem:[%s137_s1] sm:$0xff]  ;;  %s110_s16 = smov 32   ;;  %vm31_vm0 = vcmask 261120   ;;  %s111_s17 = smov [#allocation5]  }
   0x6   :  { %28 = vrot.lane.b32.xlu0 %v26_v0, %s110_s16  ;;  %v33_v1 = vld [vmem:[#allocation2] sm:$0xff]  ;;  %s42_s18 = sshll.u32 %s111_s17, 4  ;;  %s44_s0 = sshll.u32 %s138_s2, 4  ;;  %vm35_vm1 = vcmask 523264   ;;  %s43_s18 = int_to_ptr.vmem [resolvable:$true] %s42_s18  ;;  %s45_s0 = int_to_ptr.hbm [resolvable:$true] %s44_s0 }
  0x78   :  { %v29_v2 = vpop.permute.xlu0 %28 }
  0x79   :  { %v32_v3 = vsel %vm31_vm0, %v26_v0, %v29_v2 }
  0x7a   :  { %v34_v4 = vadd.f32 %v33_v1, %v32_v3 }
  0x7c   :  { %36 = vst.msk [vmem:[#allocation5] sm:$0xff] %vm35_vm1, %v34_v4 }
  0x7d   :  { %47 = dma.vmem_to_hbm [thread:$0]  %s43_s18, 128, %s45_s0, [#allocation4]  }
  0x7e   :  { %107 = dma.done.wait [#allocation4], 128  }
  0x7f   :  { %108 = vsyncadd [#allocation4], 4294967168 }
  0x80   :  { %52 = vsyncpa [#allocation3], 1 }
  0x81   :  { %53 = vsyncpa [#allocation4], 1 }

</bundles_post_ra>
